<compile_context>
chip_gen: v7x
topology: tpu7x:2x2x1
jax: 0.10.0
libtpu: 0.0.40
codegen_flags: <defaults>
</compile_context>

<pallas_src>
import functools

import jax
import jax.numpy as jnp
from jax.experimental import pallas as pl
from jax.experimental.pallas import tpu as pltpu


def _round_up(n, m):
    return ((n + m - 1) // m) * m


def _mlp_kernel(x_ref, w1_ref, b1_ref, w2_ref, b2_ref, w3_ref, b3_ref, o_ref):
    # Layer 1: (TB, D)bf16 @ (D, 512)bf16 -> f32 acc; bias + ReLU in f32.
    h1 = jnp.dot(x_ref[...], w1_ref[...], preferred_element_type=jnp.float32)
    h1 = jnp.maximum(h1 + b1_ref[...], 0.0)
    # Layer 2: (TB, 512) @ (512, 256) -> f32 acc; bias + ReLU in f32.
    h2 = jnp.dot(h1.astype(jnp.bfloat16), w2_ref[...],
                 preferred_element_type=jnp.float32)
    h2 = jnp.maximum(h2 + b2_ref[...], 0.0)
    # Layer 3: (TB, 256) @ (256, out_pad) -> f32; lane-dense (out_pad = k*128) store.
    h3 = jnp.dot(h2.astype(jnp.bfloat16), w3_ref[...],
                 preferred_element_type=jnp.float32)
    o_ref[...] = (h3 + b3_ref[...]).astype(o_ref.dtype)


@functools.partial(jax.jit, static_argnames=("num_particles",))
def particle_picker_forward(x, params, num_particles):
    """x: (B, latent_dim) float32 -> (B, num_particles, 2) float32."""
    w1, b1, w2, b2, w3, b3 = params
    B, D = x.shape
    out_dim = num_particles * 2
    H1 = w1.shape[1]
    H2 = w2.shape[1]

    # Lane-dense output: pad the last-layer columns up to a multiple of 128.
    out_pad = max(128, _round_up(out_dim, 128))
    pad_cols = out_pad - out_dim
    w3p = jnp.pad(w3, ((0, 0), (0, pad_cols)))
    b3p = jnp.pad(b3, ((0, 0), (0, pad_cols)))

    # Batch tiling: TB fills the MXU for large B, clamps (8-aligned) for small B.
    TB = min(512, _round_up(B, 8))
    B_pad = _round_up(B, TB)
    if B_pad != B:
        x = jnp.pad(x, ((0, B_pad - B), (0, 0)))
    grid = (B_pad // TB,)

    # bf16 matmul operands (f32 accumulation in-kernel); biases stay f32.
    xb = x.astype(jnp.bfloat16)
    w1b = w1.astype(jnp.bfloat16)
    w2b = w2.astype(jnp.bfloat16)
    w3b = w3p.astype(jnp.bfloat16)
    b1f = b1.astype(jnp.float32)
    b2f = b2.astype(jnp.float32)
    b3f = b3p.astype(jnp.float32)

    flops = 2 * B_pad * (D * H1 + H1 * H2 + H2 * out_pad)
    bytes_accessed = (
        xb.size * 2 + w1b.size * 2 + w2b.size * 2 + w3b.size * 2
        + b1f.size * 4 + b2f.size * 4 + b3f.size * 4
        + B_pad * out_pad * 4
    )

    flat = pl.pallas_call(
        _mlp_kernel,
        out_shape=jax.ShapeDtypeStruct((B_pad, out_pad), jnp.float32),
        grid=grid,
        in_specs=[
            pl.BlockSpec((TB, D), lambda i: (i, 0)),       # x: batch-tiled
            pl.BlockSpec((D, H1), lambda i: (0, 0)),       # weights/biases: resident
            pl.BlockSpec((1, H1), lambda i: (0, 0)),
            pl.BlockSpec((H1, H2), lambda i: (0, 0)),
            pl.BlockSpec((1, H2), lambda i: (0, 0)),
            pl.BlockSpec((H2, out_pad), lambda i: (0, 0)),
            pl.BlockSpec((1, out_pad), lambda i: (0, 0)),
        ],
        out_specs=pl.BlockSpec((TB, out_pad), lambda i: (i, 0)),
        compiler_params=pltpu.CompilerParams(
            dimension_semantics=("parallel",),
        ),
        cost_estimate=pl.CostEstimate(
            flops=flops, transcendentals=0, bytes_accessed=bytes_accessed),
    )(xb, w1b, b1f, w2b, b2f, w3b, b3f)

    # Strip batch/lane padding, reshape to (B, num_particles, 2).
    return flat[:B, :out_dim].reshape(-1, num_particles, 2)


def init_params(key, latent_dim, num_particles):
    """PyTorch nn.Linear-style init (uniform +-1/sqrt(fan_in)); weights stored
    transposed to (in_features, out_features), f32 master copies."""
    dims = [(latent_dim, 512), (512, 256), (256, num_particles * 2)]
    params = []
    for (fan_in, fan_out) in dims:
        key, kw, kb = jax.random.split(key, 3)
        bound = 1.0 / jnp.sqrt(fan_in)
        w = jax.random.uniform(kw, (fan_in, fan_out), jnp.float32, -bound, bound)
        b = jax.random.uniform(kb, (1, fan_out), jnp.float32, -bound, bound)
        params += [w, b]
    return tuple(params)


if __name__ == "__main__":
    latent_dim = 32
    num_particles = 16
    batch = 8

    key = jax.random.PRNGKey(0)
    key, kx = jax.random.split(key)
    x = jax.random.normal(kx, (batch, latent_dim), jnp.float32)
    params = init_params(key, latent_dim, num_particles)

    out = particle_picker_forward(x, params, num_particles)
    out = jax.block_until_ready(out)

    # Pure-JAX reference using the same bf16-input / f32-accumulate matmul recipe.
    w1, b1, w2, b2, w3, b3 = params
    bf = jnp.bfloat16
    h = jnp.maximum(
        jnp.dot(x.astype(bf), w1.astype(bf), preferred_element_type=jnp.float32) + b1, 0.0)
    h = jnp.maximum(
        jnp.dot(h.astype(bf), w2.astype(bf), preferred_element_type=jnp.float32) + b2, 0.0)
    ref = (jnp.dot(h.astype(bf), w3.astype(bf), preferred_element_type=jnp.float32) + b3)
    ref = ref.reshape(-1, num_particles, 2)

    assert out.shape == (batch, num_particles, 2)
    assert jnp.allclose(out, ref, atol=2e-2, rtol=2e-2), \
        float(jnp.max(jnp.abs(out - ref)))

    print("KERNEL_OK")
</pallas_src>

<mosaic_0001>
module attributes {stable_mosaic.version = 11 : i64} {
  func.func @_mlp_kernel(%arg0: i32, %arg1: memref<8x32xbf16, #tpu.memory_space<vmem>>, %arg2: memref<32x512xbf16, #tpu.memory_space<vmem>>, %arg3: memref<1x512xf32, #tpu.memory_space<vmem>>, %arg4: memref<512x256xbf16, #tpu.memory_space<vmem>>, %arg5: memref<1x256xf32, #tpu.memory_space<vmem>>, %arg6: memref<256x128xbf16, #tpu.memory_space<vmem>>, %arg7: memref<1x128xf32, #tpu.memory_space<vmem>>, %arg8: memref<8x128xf32, #tpu.memory_space<vmem>>) attributes {dimension_semantics = [#tpu.dimension_semantics<parallel>], iteration_bounds = array<i64: 1>, scalar_prefetch = 0 : i64, scratch_operands = 0 : i64, tpu.core_type = #tpu.core_type<tc>, window_params = [{transform_indices = @transform_0, window_bounds = array<i64: 8, 32>}, {pipeline_mode = #tpu.pipeline_mode<synchronous>, transform_indices = @transform_1, window_bounds = array<i64: 32, 512>}, {pipeline_mode = #tpu.pipeline_mode<synchronous>, transform_indices = @transform_2, window_bounds = array<i64: 1, 512>}, {pipeline_mode = #tpu.pipeline_mode<synchronous>, transform_indices = @transform_3, window_bounds = array<i64: 512, 256>}, {pipeline_mode = #tpu.pipeline_mode<synchronous>, transform_indices = @transform_4, window_bounds = array<i64: 1, 256>}, {pipeline_mode = #tpu.pipeline_mode<synchronous>, transform_indices = @transform_5, window_bounds = array<i64: 256, 128>}, {pipeline_mode = #tpu.pipeline_mode<synchronous>, transform_indices = @transform_6, window_bounds = array<i64: 1, 128>}, {transform_indices = @transform_7, window_bounds = array<i64: 8, 128>}]} {
    %c0 = arith.constant 0 : index
    %c0_0 = arith.constant 0 : index
    %0 = vector.load %arg1[%c0, %c0_0] : memref<8x32xbf16, #tpu.memory_space<vmem>>, vector<8x32xbf16>
    %c0_1 = arith.constant 0 : index
    %c0_2 = arith.constant 0 : index
    %1 = vector.load %arg2[%c0_1, %c0_2] : memref<32x512xbf16, #tpu.memory_space<vmem>>, vector<32x512xbf16>
    %cst = arith.constant dense<0.000000e+00> : vector<8x512xf32>
    %2 = tpu.matmul %0, %1, %cst {dimension_numbers = #tpu.dot_dimension_numbers<[1], [0], [0], [1], [0, 0, 1, 1], [], []>} : vector<8x32xbf16>, vector<32x512xbf16>, vector<8x512xf32> -> vector<8x512xf32>
    %c0_3 = arith.constant 0 : index
    %c0_4 = arith.constant 0 : index
    %3 = vector.load %arg3[%c0_3, %c0_4] : memref<1x512xf32, #tpu.memory_space<vmem>>, vector<1x512xf32>
    %4 = vector.broadcast %3 : vector<1x512xf32> to vector<8x512xf32>
    %5 = arith.addf %2, %4 : vector<8x512xf32>
    %cst_5 = arith.constant 0.000000e+00 : f32
    %6 = vector.broadcast %cst_5 : f32 to vector<8x512xf32>
    %7 = arith.maximumf %5, %6 : vector<8x512xf32>
    %8 = arith.truncf %7 : vector<8x512xf32> to vector<8x512xbf16>
    %c0_6 = arith.constant 0 : index
    %c0_7 = arith.constant 0 : index
    %9 = vector.load %arg4[%c0_6, %c0_7] : memref<512x256xbf16, #tpu.memory_space<vmem>>, vector<512x256xbf16>
    %cst_8 = arith.constant dense<0.000000e+00> : vector<8x256xf32>
    %10 = tpu.matmul %8, %9, %cst_8 {dimension_numbers = #tpu.dot_dimension_numbers<[1], [0], [0], [1], [0, 0, 1, 1], [], []>} : vector<8x512xbf16>, vector<512x256xbf16>, vector<8x256xf32> -> vector<8x256xf32>
    %c0_9 = arith.constant 0 : index
    %c0_10 = arith.constant 0 : index
    %11 = vector.load %arg5[%c0_9, %c0_10] : memref<1x256xf32, #tpu.memory_space<vmem>>, vector<1x256xf32>
    %12 = vector.broadcast %11 : vector<1x256xf32> to vector<8x256xf32>
    %13 = arith.addf %10, %12 : vector<8x256xf32>
    %cst_11 = arith.constant 0.000000e+00 : f32
    %14 = vector.broadcast %cst_11 : f32 to vector<8x256xf32>
    %15 = arith.maximumf %13, %14 : vector<8x256xf32>
    %16 = arith.truncf %15 : vector<8x256xf32> to vector<8x256xbf16>
    %c0_12 = arith.constant 0 : index
    %c0_13 = arith.constant 0 : index
    %17 = vector.load %arg6[%c0_12, %c0_13] : memref<256x128xbf16, #tpu.memory_space<vmem>>, vector<256x128xbf16>
    %cst_14 = arith.constant dense<0.000000e+00> : vector<8x128xf32>
    %18 = tpu.matmul %16, %17, %cst_14 {dimension_numbers = #tpu.dot_dimension_numbers<[1], [0], [0], [1], [0, 0, 1, 1], [], []>} : vector<8x256xbf16>, vector<256x128xbf16>, vector<8x128xf32> -> vector<8x128xf32>
    %c0_15 = arith.constant 0 : index
    %c0_16 = arith.constant 0 : index
    %19 = vector.load %arg7[%c0_15, %c0_16] : memref<1x128xf32, #tpu.memory_space<vmem>>, vector<1x128xf32>
    %20 = vector.broadcast %19 : vector<1x128xf32> to vector<8x128xf32>
    %21 = arith.addf %18, %20 : vector<8x128xf32>
    %c0_17 = arith.constant 0 : index
    %c0_18 = arith.constant 0 : index
    %22 = vector.load %arg8[%c0_17, %c0_18] : memref<8x128xf32, #tpu.memory_space<vmem>>, vector<8x128xf32>
    tpu.vector_store %arg8[%c0_17, %c0_18], %21 {strides = array<i32>} : memref<8x128xf32, #tpu.memory_space<vmem>>, vector<8x128xf32>,
    return
  }
  func.func @transform_0(%arg0: i32) -> (i32, i32) {
    %c0_i32 = arith.constant 0 : i32
    %c0_i32_0 = arith.constant 0 : i32
    return %arg0, %c0_i32 : i32, i32
  }
  func.func @transform_1(%arg0: i32) -> (i32, i32) {
    %c0_i32 = arith.constant 0 : i32
    %c0_i32_0 = arith.constant 0 : i32
    %c0_i32_1 = arith.constant 0 : i32
    return %c0_i32, %c0_i32_0 : i32, i32
  }
  func.func @transform_2(%arg0: i32) -> (i32, i32) {
    %c0_i32 = arith.constant 0 : i32
    %c0_i32_0 = arith.constant 0 : i32
    %c0_i32_1 = arith.constant 0 : i32
    return %c0_i32, %c0_i32_0 : i32, i32
  }
  func.func @transform_3(%arg0: i32) -> (i32, i32) {
    %c0_i32 = arith.constant 0 : i32
    %c0_i32_0 = arith.constant 0 : i32
    %c0_i32_1 = arith.constant 0 : i32
    return %c0_i32, %c0_i32_0 : i32, i32
  }
  func.func @transform_4(%arg0: i32) -> (i32, i32) {
    %c0_i32 = arith.constant 0 : i32
    %c0_i32_0 = arith.constant 0 : i32
    %c0_i32_1 = arith.constant 0 : i32
    return %c0_i32, %c0_i32_0 : i32, i32
  }
  func.func @transform_5(%arg0: i32) -> (i32, i32) {
    %c0_i32 = arith.constant 0 : i32
    %c0_i32_0 = arith.constant 0 : i32
    %c0_i32_1 = arith.constant 0 : i32
    return %c0_i32, %c0_i32_0 : i32, i32
  }
  func.func @transform_6(%arg0: i32) -> (i32, i32) {
    %c0_i32 = arith.constant 0 : i32
    %c0_i32_0 = arith.constant 0 : i32
    %c0_i32_1 = arith.constant 0 : i32
    return %c0_i32, %c0_i32_0 : i32, i32
  }
  func.func @transform_7(%arg0: i32) -> (i32, i32) {
    %c0_i32 = arith.constant 0 : i32
    %c0_i32_0 = arith.constant 0 : i32
    return %arg0, %c0_i32 : i32, i32
  }
}

</mosaic_0001>

<bundles_post_ra>
// kernel: particle_picker_forward.1
= control target key start
LH: loop header
LB: loop body
LE: loop exit
PB: predicated region body
PF: predicated region fallthrough
CT: control target
= control target key end

     0   :  { %v1096_v1 = vmov 0   ;;  %vm98_vm0 = vcmask 261120   ;;  %s1432_s1 = inlined_call_operand.vmem [shape: bf16[32,512], index: 1, kind: input, shape index: {}]   ;;  %s1433_s0 = inlined_call_operand.vmem [shape: bf16[8,32], index: 0, kind: input, shape index: {}]   ;;  %s1434_s3 = inlined_call_operand.vmem [shape: bf16[512,256], index: 3, kind: input, shape index: {}]   ;;  %s1435_s5 = inlined_call_operand.vmem [shape: bf16[256,128], index: 5, kind: input, shape index: {}]   ;;  %s1436_s2 = inlined_call_operand.vmem [shape: f32[1,512], index: 2, kind: input, shape index: {}]   ;;  %s1437_s4 = inlined_call_operand.vmem [shape: f32[1,256], index: 4, kind: input, shape index: {}]   ;;  %s1438_s6 = inlined_call_operand.vmem [shape: f32[1,128], index: 6, kind: input, shape index: {}]   ;;  %s1439_s7 = inlined_call_operand.vmem [shape: f32[8,128], index: 7, kind: output, shape index: {}]  }
   0x1   :  { %v972_v0 = vld [vmem:[%s1432_s1 + $0x4] ss:$16 sps:$4 sm:$0xff]   ;;  %134 = vmatprep.mubr.bf16.mxu0 %v1096_v1  ;;  %v974_v2 = vld [vmem:[%s1432_s1] ss:$16 sps:$4 sm:$0xff]   ;;  %v980_v5 = vld [vmem:[%s1432_s1 + $0xc] ss:$16 sps:$4 sm:$0xff]  }
   0x2   :  { %102 = vmatprep.subr.bf16.mxu0 %v972_v0  ;;  %v975_v3 = vld [vmem:[%s1432_s1 + $0x24] ss:$16 sps:$4 sm:$0xff]   ;;  %v977_v4 = vld [vmem:[%s1432_s1 + $0x20] ss:$16 sps:$4 sm:$0xff]   ;;  %v978_v7 = vld [vmem:[%s1432_s1 + $0x8] ss:$16 sps:$4 sm:$0xff]  }
   0x3   :  { %103 = vmatpush1.bf16.msra.mxu0 %v974_v2  ;;  %v27_v6 = vld [vmem:[%s1433_s0] sm:$0xf]  ;;  %v984_v8 = vld [vmem:[%s1434_s3 + $0x4] ss:$8 sps:$4 sm:$0xff]   ;;  %v987_v10 = vld [vmem:[%s1434_s3 + $0x14] ss:$8 sps:$4 sm:$0xff]  }
   0x4   :  { %104 = vmatprep.subr.bf16.mxu0 %v975_v3  ;;  %v986_v9 = vld [vmem:[%s1434_s3] ss:$8 sps:$4 sm:$0xff]   ;;  %v983_v11 = vld [vmem:[%s1432_s1 + $0x2c] ss:$16 sps:$4 sm:$0xff]   ;;  %588 = vmatprep.subr.bf16.mxu1 %v984_v8  ;;  %v989_v12 = vld [vmem:[%s1434_s3 + $0x10] ss:$8 sps:$4 sm:$0xff]  }
   0x5   :  { %589 = vmatpush1.bf16.msra.mxu1 %v986_v9  ;;  %v990_v13 = vld [vmem:[%s1434_s3 + $0x24] ss:$8 sps:$4 sm:$0xff]   ;;  %v981_v14 = vld [vmem:[%s1432_s1 + $0x28] ss:$16 sps:$4 sm:$0xff]   ;;  %v996_v17 = vld [vmem:[%s1434_s3 + $0x34] ss:$8 sps:$4 sm:$0xff]  }
   0x6   :  { %590 = vmatprep.subr.bf16.mxu1 %v987_v10  ;;  %v994_v15 = vld [vmem:[%s1434_s3 + $0x104] ss:$8 sps:$4 sm:$0xff]   ;;  %v995_v16 = vld [vmem:[%s1434_s3 + $0x20] ss:$8 sps:$4 sm:$0xff]   ;;  %v1000_v19 = vld [vmem:[%s1434_s3 + $0x114] ss:$8 sps:$4 sm:$0xff]  }
   0x7   :  { %105 = vmatpush1.bf16.msra.mxu0 %v977_v4  ;;  %v992_v18 = vld [vmem:[%s1434_s3 + $0x100] ss:$8 sps:$4 sm:$0xff]   ;;  %v1001_v20 = vld [vmem:[%s1434_s3 + $0x30] ss:$8 sps:$4 sm:$0xff]   ;;  %v1002_v21 = vld [vmem:[%s1434_s3 + $0x44] ss:$8 sps:$4 sm:$0xff]  }
   0x8   :  { %143 = vmatprep.subr.bf16.mxu0 %v980_v5  ;;  %v998_v22 = vld [vmem:[%s1434_s3 + $0x110] ss:$8 sps:$4 sm:$0xff]   ;;  %v1006_v23 = vld [vmem:[%s1434_s3 + $0x124] ss:$8 sps:$4 sm:$0xff]   ;;  %v1007_v24 = vld [vmem:[%s1434_s3 + $0x40] ss:$8 sps:$4 sm:$0xff]  }
   0x9   :  { %591 = vmatpush1.bf16.msra.mxu1 %v989_v12  ;;  %v1008_v25 = vld [vmem:[%s1434_s3 + $0x54] ss:$8 sps:$4 sm:$0xff]   ;;  %v1004_v26 = vld [vmem:[%s1434_s3 + $0x120] ss:$8 sps:$4 sm:$0xff]   ;;  %v1013_v28 = vld [vmem:[%s1434_s3 + $0x50] ss:$8 sps:$4 sm:$0xff]  }
   0xa   :  { %862 = vmatmul.mubr.msk.bf16.vlgmr.msra.gmra.mrb[0].mxu0 %vm98_vm0, %v27_v6  ;;  %592 = vmatprep.subr.bf16.mxu1 %v990_v13  ;;  %v1012_v27 = vld [vmem:[%s1434_s3 + $0x134] ss:$8 sps:$4 sm:$0xff]   ;;  %v1014_v29 = vld [vmem:[%s1434_s3 + $0x64] ss:$8 sps:$4 sm:$0xff]   ;;  %v1010_v30 = vld [vmem:[%s1434_s3 + $0x130] ss:$8 sps:$4 sm:$0xff]  }
   0xb   :  { %144 = vmatpush1.bf16.msra.mxu0 %v978_v7  ;;  %175 = vmatprep.mubr.bf16.mxu0 %v1096_v1  ;;  %v1018_v31 = vld [vmem:[%s1434_s3 + $0x144] ss:$8 sps:$4 sm:$0xff]   ;;  %v1019_v32 = vld [vmem:[%s1434_s3 + $0x60] ss:$8 sps:$4 sm:$0xff]   ;;  %v1020_v33 = vld [vmem:[%s1434_s3 + $0x74] ss:$8 sps:$4 sm:$0xff]  }
   0xc   :  { %145 = vmatprep.subr.bf16.mxu0 %v983_v11  ;;  %v1016_v34 = vld [vmem:[%s1434_s3 + $0x140] ss:$8 sps:$4 sm:$0xff]   ;;  %v1024_v35 = vld [vmem:[%s1434_s3 + $0x154] ss:$8 sps:$4 sm:$0xff]   ;;  %v1025_v36 = vld [vmem:[%s1434_s3 + $0x70] ss:$8 sps:$4 sm:$0xff]   ;;  %v38_v11 = vlaneseq }
   0xd   :  { %593 = vmatpush1.bf16.msra.mxu1 %v995_v16  ;;  %v1026_v37 = vld [vmem:[%s1434_s3 + $0x84] ss:$8 sps:$4 sm:$0xff]   ;;  %v1022_v38 = vld [vmem:[%s1434_s3 + $0x150] ss:$8 sps:$4 sm:$0xff]   ;;  %v1031_v40 = vld [vmem:[%s1434_s3 + $0x80] ss:$8 sps:$4 sm:$0xff]  }
   0xe   :  { %594 = vmatprep.subr.bf16.mxu1 %v996_v17  ;;  %v1030_v39 = vld [vmem:[%s1434_s3 + $0x164] ss:$8 sps:$4 sm:$0xff]   ;;  %v1032_v41 = vld [vmem:[%s1434_s3 + $0x94] ss:$8 sps:$4 sm:$0xff]   ;;  %v1028_v42 = vld [vmem:[%s1434_s3 + $0x160] ss:$8 sps:$4 sm:$0xff]  }
   0xf   :  { %146 = vmatpush1.bf16.msra.mxu0 %v981_v14  ;;  %v1036_v43 = vld [vmem:[%s1434_s3 + $0x174] ss:$8 sps:$4 sm:$0xff]   ;;  %v1037_v44 = vld [vmem:[%s1434_s3 + $0x90] ss:$8 sps:$4 sm:$0xff]   ;;  %v1038_v45 = vld [vmem:[%s1434_s3 + $0xa4] ss:$8 sps:$4 sm:$0xff]  }
  0x10   :  { %629 = vmatprep.subr.bf16.mxu0 %v994_v15  ;;  %v1034_v46 = vld [vmem:[%s1434_s3 + $0x170] ss:$8 sps:$4 sm:$0xff]   ;;  %v1042_v47 = vld [vmem:[%s1434_s3 + $0x184] ss:$8 sps:$4 sm:$0xff]   ;;  %v1043_v48 = vld [vmem:[%s1434_s3 + $0xa0] ss:$8 sps:$4 sm:$0xff]  }
  0x11   :  { %595 = vmatpush1.bf16.msra.mxu1 %v1001_v20  ;;  %v1044_v49 = vld [vmem:[%s1434_s3 + $0xb4] ss:$8 sps:$4 sm:$0xff]   ;;  %v1040_v50 = vld [vmem:[%s1434_s3 + $0x180] ss:$8 sps:$4 sm:$0xff]   ;;  %v1049_v52 = vld [vmem:[%s1434_s3 + $0xb0] ss:$8 sps:$4 sm:$0xff]  }
  0x12   :  { %863 = vmatmul.mubr.msk.bf16.vlgmr.msra.gmra.mrb[4].mxu0 %vm98_vm0, %v27_v6  ;;  %596 = vmatprep.subr.bf16.mxu1 %v1002_v21  ;;  %v1048_v51 = vld [vmem:[%s1434_s3 + $0x194] ss:$8 sps:$4 sm:$0xff]   ;;  %v1050_v53 = vld [vmem:[%s1434_s3 + $0xc4] ss:$8 sps:$4 sm:$0xff]   ;;  %v1046_v54 = vld [vmem:[%s1434_s3 + $0x190] ss:$8 sps:$4 sm:$0xff]  }
  0x13   :  { %630 = vmatpush1.bf16.msra.mxu0 %v992_v18  ;;  %v1054_v55 = vld [vmem:[%s1434_s3 + $0x1a4] ss:$8 sps:$4 sm:$0xff]   ;;  %v1055_v56 = vld [vmem:[%s1434_s3 + $0xc0] ss:$8 sps:$4 sm:$0xff]   ;;  %v1056_v57 = vld [vmem:[%s1434_s3 + $0xd4] ss:$8 sps:$4 sm:$0xff]  }
  0x14   :  { %631 = vmatprep.subr.bf16.mxu0 %v1000_v19  ;;  %v1052_v58 = vld [vmem:[%s1434_s3 + $0x1a0] ss:$8 sps:$4 sm:$0xff]   ;;  %v1060_v59 = vld [vmem:[%s1434_s3 + $0x1b4] ss:$8 sps:$4 sm:$0xff]   ;;  %v1061_v60 = vld [vmem:[%s1434_s3 + $0xd0] ss:$8 sps:$4 sm:$0xff]  }
  0x15   :  { %597 = vmatpush1.bf16.msra.mxu1 %v1007_v24  ;;  %v1058_v61 = vld [vmem:[%s1434_s3 + $0x1b0] ss:$8 sps:$4 sm:$0xff]   ;;  %v1062_v62 = vld [vmem:[%s1434_s3 + $0xe4] ss:$8 sps:$4 sm:$0xff]   ;;  %v1064_v0 = vld [vmem:[%s1434_s3 + $0x1c0] ss:$8 sps:$4 sm:$0xff]  }
  0x16   :  { %598 = vmatprep.subr.bf16.mxu1 %v1008_v25  ;;  %v1066_v63 = vld [vmem:[%s1434_s3 + $0x1c4] ss:$8 sps:$4 sm:$0xff]   ;;  %v1067_v1 = vld [vmem:[%s1434_s3 + $0xe0] ss:$8 sps:$4 sm:$0xff]   ;;  %v1068_v2 = vld [vmem:[%s1434_s3 + $0xf4] ss:$8 sps:$4 sm:$0xff]  }
  0x17   :  { %632 = vmatpush1.bf16.msra.mxu0 %v998_v22  ;;  %v1072_v3 = vld [vmem:[%s1434_s3 + $0x1d4] ss:$8 sps:$4 sm:$0xff]   ;;  %v1070_v4 = vld [vmem:[%s1434_s3 + $0x1d0] ss:$8 sps:$4 sm:$0xff]   ;;  %v1076_v6 = vld [vmem:[%s1434_s3 + $0x1e4] ss:$8 sps:$4 sm:$0xff]  }
  0x18   :  { %633 = vmatprep.subr.bf16.mxu0 %v1006_v23  ;;  %v1073_v5 = vld [vmem:[%s1434_s3 + $0xf0] ss:$8 sps:$4 sm:$0xff]   ;;  %v1074_v7 = vld [vmem:[%s1434_s3 + $0x1e0] ss:$8 sps:$4 sm:$0xff]   ;;  %v1079_v8 = vld [vmem:[%s1434_s3 + $0x1f4] ss:$8 sps:$4 sm:$0xff]  }
  0x19   :  { %599 = vmatpush1.bf16.msra.mxu1 %v1013_v28  ;;  %v1077_v9 = vld [vmem:[%s1434_s3 + $0x1f0] ss:$8 sps:$4 sm:$0xff]   ;;  %v1080_v10 = vld [vmem:[%s1435_s5 + $0x40] sm:$0xff]   ;;  %v1361_v12 = vshrl.u32 %v38_v11, 7 }
  0x1a   :  { %600 = vmatprep.subr.bf16.mxu1 %v1014_v29  ;;  %v36_v14 = vld [vmem:[%s1436_s2] sm:$0xf] }
  0x1b   :  { %634 = vmatpush1.bf16.msra.mxu0 %v1004_v26  ;;  %v40_v13 = vsub.s32 0, %v1361_v12  ;;  %v44_v15 = vsub.s32 1, %v1361_v12  ;;  %v48_v21 = vsub.s32 2, %v1361_v12  ;;  %v52_v24 = vsub.s32 3, %v1361_v12  ;;  %v928_v12 = vld [vmem:[%s1438_s6] ss:$0 sm:$0xff] }
  0x1c   :  { %635 = vmatprep.subr.bf16.mxu0 %v1012_v27 }
  0x1d   :  { %601 = vmatpush1.bf16.msra.mxu1 %v1019_v32  ;;  %v41_v16 = vrot.slane %v36_v14, %v40_v13  ;;  %v45_v17 = vrot.slane %v36_v14, %v44_v15  ;;  %v49_v28 = vrot.slane %v36_v14, %v48_v21 }
  0x1e   :  { %602 = vmatprep.subr.bf16.mxu1 %v1020_v33  ;;  %v1082_v33 = vld [vmem:[%s1435_s5 + $0x48] sm:$0xff]  }
  0x1f   :  { %636 = vmatpush1.bf16.msra.mxu0 %v1010_v30  ;;  %v53_v30 = vrot.slane %v36_v14, %v52_v24 }
  0x20   :  { %637 = vmatprep.subr.bf16.mxu0 %v1018_v31  ;;  %v1081_v31 = vld [vmem:[%s1435_s5] sm:$0xff]  }
  0x21   :  { %603 = vmatpush1.bf16.msra.mxu1 %v1025_v36 }
  0x22   :  { %604 = vmatprep.subr.bf16.mxu1 %v1026_v37 }
  0x23   :  { %638 = vmatpush1.bf16.msra.mxu0 %v1016_v34 }
  0x24   :  { %639 = vmatprep.subr.bf16.mxu0 %v1024_v35 }
  0x25   :  { %605 = vmatpush1.bf16.msra.mxu1 %v1031_v40 }
  0x26   :  { %606 = vmatprep.subr.bf16.mxu1 %v1032_v41 }
  0x27   :  { %640 = vmatpush1.bf16.msra.mxu0 %v1022_v38 }
  0x28   :  { %641 = vmatprep.subr.bf16.mxu0 %v1030_v39  ;;  %v1083_v39 = vld [vmem:[%s1435_s5 + $0x8] sm:$0xff]  }
  0x29   :  { %607 = vmatpush1.bf16.msra.mxu1 %v1037_v44 }
  0x2a   :  { %608 = vmatprep.subr.bf16.mxu1 %v1038_v45  ;;  %v1085_v45 = vld [vmem:[%s1435_s5 + $0x10] sm:$0xff]  }
  0x2b   :  { %642 = vmatpush1.bf16.msra.mxu0 %v1028_v42  ;;  %v1084_v42 = vld [vmem:[%s1435_s5 + $0x50] sm:$0xff]  }
  0x2c   :  { %643 = vmatprep.subr.bf16.mxu0 %v1036_v43 }
  0x2d   :  { %609 = vmatpush1.bf16.msra.mxu1 %v1043_v48  ;;  %v1087_v48 = vld [vmem:[%s1435_s5 + $0x18] sm:$0xff]  }
  0x2e   :  { %610 = vmatprep.subr.bf16.mxu1 %v1044_v49  ;;  %v1088_v49 = vld [vmem:[%s1435_s5 + $0x60] sm:$0xff]  }
  0x2f   :  { %644 = vmatpush1.bf16.msra.mxu0 %v1034_v46 }
  0x30   :  { %645 = vmatprep.subr.bf16.mxu0 %v1042_v47  ;;  %v1086_v47 = vld [vmem:[%s1435_s5 + $0x58] sm:$0xff]  }
  0x31   :  { %611 = vmatpush1.bf16.msra.mxu1 %v1049_v52  ;;  %v1091_v52 = vld [vmem:[%s1435_s5 + $0x28] sm:$0xff]  }
  0x32   :  { %612 = vmatprep.subr.bf16.mxu1 %v1050_v53  ;;  %v1092_v53 = vld [vmem:[%s1435_s5 + $0x70] sm:$0xff]  }
  0x33   :  { %646 = vmatpush1.bf16.msra.mxu0 %v1040_v50  ;;  %v1089_v50 = vld [vmem:[%s1435_s5 + $0x20] sm:$0xff]  }
  0x34   :  { %647 = vmatprep.subr.bf16.mxu0 %v1048_v51  ;;  %v1090_v51 = vld [vmem:[%s1435_s5 + $0x68] sm:$0xff]  }
  0x35   :  { %613 = vmatpush1.bf16.msra.mxu1 %v1055_v56  ;;  %v1095_v56 = vld [vmem:[%s1435_s5 + $0x38] sm:$0xff]  }
  0x36   :  { %614 = vmatprep.subr.bf16.mxu1 %v1056_v57  ;;  %v256_v57 = vld [vmem:[%s1437_s4] sm:$0x3] }
  0x37   :  { %648 = vmatpush1.bf16.msra.mxu0 %v1046_v54  ;;  %v1093_v54 = vld [vmem:[%s1435_s5 + $0x30] sm:$0xff]  }
  0x38   :  { %649 = vmatprep.subr.bf16.mxu0 %v1054_v55  ;;  %v1094_v55 = vld [vmem:[%s1435_s5 + $0x78] sm:$0xff]  }
  0x39   :  { %615 = vmatpush1.bf16.msra.mxu1 %v1061_v60 }
  0x3a   :  { %616 = vmatprep.subr.bf16.mxu1 %v1062_v62 }
  0x3b   :  { %650 = vmatpush1.bf16.msra.mxu0 %v1052_v58 }
  0x3c   :  { %651 = vmatprep.subr.bf16.mxu0 %v1060_v59 }
  0x3d   :  { %617 = vmatpush1.bf16.msra.mxu1 %v1067_v1 }
  0x3e   :  { %618 = vmatprep.subr.bf16.mxu1 %v1068_v2 }
  0x3f   :  { %652 = vmatpush1.bf16.msra.mxu0 %v1058_v61  ;;  %v261_v61 = vrot.slane %v256_v57, %v40_v13 }
  0x40   :  { %653 = vmatprep.subr.bf16.mxu0 %v1066_v63  ;;  %v265_v63 = vrot.slane %v256_v57, %v44_v15 }
  0x41   :  { %619 = vmatpush1.bf16.msra.mxu1 %v1073_v5 }
  0x42   :  { %945 = vmatprep.subr.bf16.mxu1 %v1080_v10 }
  0x43   :  { %654 = vmatpush1.bf16.msra.mxu0 %v1064_v0 }
  0x44   :  { %655 = vmatprep.subr.bf16.mxu0 %v1072_v3 }
  0x47   :  { %656 = vmatpush1.bf16.msra.mxu0 %v1070_v4 }
  0x48   :  { %657 = vmatprep.subr.bf16.mxu0 %v1076_v6 }
  0x4b   :  { %658 = vmatpush1.bf16.msra.mxu0 %v1074_v7 }
  0x4c   :  { %659 = vmatprep.subr.bf16.mxu0 %v1079_v8 }
  0x4f   :  { %660 = vmatpush1.bf16.msra.mxu0 %v1077_v9 }
  0xdd   :  { %v136_v18 = vpop.f32.mrb[0].mxu0 }
  0xde   :  { %v137_v19 = vadd.f32 %v136_v18, %v41_v16  ;;  %v138_v20 = vpop.f32.mrb[1].mxu0 }
  0xdf   :  { %v139_v22 = vadd.f32 %v138_v20, %v45_v17  ;;  %v140_v23 = vpop.f32.mrb[2].mxu0 }
  0xe0   :  { %v184_v25 = vmax.f32 %v137_v19, 0.0  ;;  %v141_v26 = vpop.f32.mrb[3].mxu0 }
  0xe1   :  { %v185_v27 = vmax.f32 %v139_v22, 0.0 }
  0xe2   :  { %v188_v32 = vpack.c.bf16 %v184_v25, %v184_v25 }
  0xe3   :  { %v189_v29 = vpack.c.bf16 %v185_v27, %v185_v27 }
  0xe5   :  { %v177_v34 = vpop.f32.mrb[4].mxu0  ;;  %620 = vmatprep.mubr.bf16.mxu1 %v189_v29 }
  0xe6   :  { %v178_v35 = vadd.f32 %v177_v34, %v49_v28  ;;  %v179_v36 = vpop.f32.mrb[5].mxu0  ;;  %621 = vmatmul.mubr.bf16.vlgmr.msra.gmra.mrb[0].mxu1 %v188_v32 }
  0xe7   :  { %v180_v37 = vadd.f32 %v179_v36, %v53_v30  ;;  %v181_v38 = vpop.f32.mrb[6].mxu0  ;;  %946 = vmatpush3.bf16.msra.mxu1 %v1081_v31 }
  0xe8   :  { %v186_v40 = vmax.f32 %v178_v35, 0.0  ;;  %v182_v41 = vpop.f32.mrb[7].mxu0  ;;  %947 = vmatprep.subr.bf16.mxu1 %v1082_v33 }
  0xe9   :  { %v187_v43 = vmax.f32 %v180_v37, 0.0 }
  0xea   :  { %v190_v46 = vpack.c.bf16 %v186_v40, %v186_v40 }
  0xeb   :  { %v191_v44 = vpack.c.bf16 %v187_v43, %v187_v43  ;;  %948 = vmatpush3.bf16.msra.mxu1 %v1083_v39 }
  0xec   :  { %949 = vmatprep.subr.bf16.mxu1 %v1084_v42 }
  0xed   :  { %661 = vmatprep.mubr.bf16.mxu0 %v191_v44 }
  0xee   :  { %662 = vmatmul.mubr.bf16.vlgmr.msra.gmra.mrb[8].mxu0 %v190_v46 }
  0xef   :  { %950 = vmatpush3.bf16.msra.mxu1 %v1085_v45 }
  0xf0   :  { %951 = vmatprep.subr.bf16.mxu1 %v1086_v47 }
  0xf3   :  { %952 = vmatpush3.bf16.msra.mxu1 %v1087_v48 }
  0xf4   :  { %953 = vmatprep.subr.bf16.mxu1 %v1088_v49 }
  0xf7   :  { %954 = vmatpush3.bf16.msra.mxu1 %v1089_v50 }
  0xf8   :  { %955 = vmatprep.subr.bf16.mxu1 %v1090_v51 }
  0xfb   :  { %956 = vmatpush3.bf16.msra.mxu1 %v1091_v52 }
  0xfc   :  { %957 = vmatprep.subr.bf16.mxu1 %v1092_v53 }
  0xff   :  { %958 = vmatpush3.bf16.msra.mxu1 %v1093_v54 }
 0x100   :  { %959 = vmatprep.subr.bf16.mxu1 %v1094_v55 }
 0x103   :  { %960 = vmatpush3.bf16.msra.mxu1 %v1095_v56 }
 0x1b9   :  { %v622_v58 = vpop.f32.mrb[0].mxu1 }
 0x1ba   :  { %v624_v59 = vpop.f32.mrb[1].mxu1  ;;  %v623_v0 = vadd.f32 %v622_v58, %v261_v61 }
 0x1bb   :  { %v626_v60 = vpop.f32.mrb[2].mxu1  ;;  %v625_v1 = vadd.f32 %v624_v59, %v265_v63 }
 0x1bc   :  { %v627_v62 = vpop.f32.mrb[3].mxu1 }
 0x1c1   :  { %v663_v2 = vpop.f32.mrb[8].mxu0 }
 0x1c2   :  { %v664_v3 = vadd.f32 %v663_v2, %v623_v0  ;;  %v665_v4 = vpop.f32.mrb[9].mxu0 }
 0x1c3   :  { %v666_v5 = vadd.f32 %v665_v4, %v625_v1  ;;  %v667_v6 = vpop.f32.mrb[10].mxu0 }
 0x1c4   :  { %v670_v7 = vmax.f32 %v664_v3, 0.0  ;;  %v668_v8 = vpop.f32.mrb[11].mxu0 }
 0x1c5   :  { %v671_v9 = vmax.f32 %v666_v5, 0.0 }
 0x1c6   :  { %v672_v11 = vpack.c.bf16 %v670_v7, %v670_v7 }
 0x1c7   :  { %v673_v10 = vpack.c.bf16 %v671_v9, %v671_v9 }
 0x1c9   :  { %841 = vmatprep.mubr.bf16.mxu1 %v673_v10 }
 0x1ca   :  { %842 = vmatmul.mubr.bf16.vlgmr.msra.gmra.mrb[4].mxu1 %v672_v11 }
 0x29d   :  { %v961_v14 = vpop.f32.mrb[4].mxu1 }
 0x29e   :  { %v962_v13 = vpop.f32.mrb[5].mxu1 }
 0x29f   :  { %v963_v15 = vadd.f32 %v962_v13, %v961_v14  ;;  %v964_v16 = vpop.f32.mrb[6].mxu1 }
 0x2a0   :  { %v965_v17 = vpop.f32.mrb[7].mxu1 }
 0x2a1   :  { %v844_v18 = vadd.f32 %v963_v15, %v928_v12 }
 0x2a3   :  { %849 = vst [vmem:[%s1439_s7] sm:$0xff] %v844_v18 }

</bundles_post_ra>
